<compile_context>
chip_gen: v5e
topology: v5e:2x2
jax: 0.10.0
libtpu: 0.0.40
codegen_flags: <defaults>
</compile_context>

<pallas_src>
import functools

import jax
import jax.numpy as jnp
from jax.experimental import pallas as pl
from jax.experimental.pallas import tpu as pltpu


def _round_up(x, m):
    return ((x + m - 1) // m) * m


def _choose_tiles(n):
    """(tm, tk, n_pad) for the A_hat @ XW aggregation kernel."""
    if n <= 512:
        n_pad = _round_up(n, 8)
        return n_pad, n_pad, n_pad          # single tile / single K step
    n_pad = _round_up(n, 512)
    tm = 512
    tk = 2048
    while n_pad % tk:
        tk //= 2                            # n_pad is a multiple of 512
    return tm, tk, n_pad


def _row_tile(n_pad, target):
    """Largest row tile <= target that divides n_pad (n_pad is mult. of 8)."""
    if n_pad <= target:
        return n_pad
    t = target
    while n_pad % t:
        t //= 2
    return t


def _vmem_limit_bytes():
    """Per-generation scoped-VMEM budget (~3/4 of physical, capped)."""
    try:
        cap = pltpu.get_tpu_info().vmem_capacity_bytes
    except Exception:
        cap = 64 * 1024 * 1024
    return int(min(64 * 1024 * 1024, cap * 3 // 4))


# ----------------------------------------------------------------------------
# Kernel 1: per-layer XW = X @ W  (row-tiled, bf16 output, hoisted out of the
# aggregation grid so it is computed exactly once per layer)
# ----------------------------------------------------------------------------
def xw_kernel(x_ref, w_ref, o_ref):
    o_ref[...] = jnp.dot(x_ref[...], w_ref[...],
                         preferred_element_type=jnp.float32).astype(o_ref.dtype)


def xw_matmul(x_bf16, w_bf16, *, tm, vmem_limit):
    n_pad, f_pad = x_bf16.shape
    h_pad = w_bf16.shape[1]
    return pl.pallas_call(
        xw_kernel,
        out_shape=jax.ShapeDtypeStruct((n_pad, h_pad), jnp.bfloat16),
        grid_spec=pltpu.PrefetchScalarGridSpec(
            num_scalar_prefetch=0,
            grid=(n_pad // tm,),
            in_specs=[
                pl.BlockSpec((tm, f_pad), lambda i: (i, 0)),
                pl.BlockSpec((f_pad, h_pad), lambda i: (0, 0)),   # W resident
            ],
            out_specs=pl.BlockSpec((tm, h_pad), lambda i: (i, 0)),
        ),
        compiler_params=pltpu.CompilerParams(
            dimension_semantics=("parallel",),
            vmem_limit_bytes=vmem_limit),
    )(x_bf16, w_bf16)


# ----------------------------------------------------------------------------
# Kernel 2: GCN aggregation  out = relu(A_hat @ XW + b)   (bf16 output)
#   grid = (N/tm, N/tk): row tiles parallel, K reduction last (arbitrary)
#   A_hat tiles streamed; XW fully VMEM-resident (fetched once), K-slab sliced
#   inside the kernel with pl.ds.
# ----------------------------------------------------------------------------
def gcn_agg_relu_kernel(a_ref, xw_ref, b_ref, o_ref, acc_ref):
    k = pl.program_id(1)
    tk = a_ref.shape[1]

    @pl.when(k == 0)
    def _():
        acc_ref[...] = jnp.zeros_like(acc_ref)

    off = pl.multiple_of(k * tk, tk)
    acc_ref[...] += jnp.dot(a_ref[...], xw_ref[pl.ds(off, tk), :],
                            preferred_element_type=jnp.float32)

    @pl.when(k == pl.num_programs(1) - 1)
    def _():
        o_ref[...] = jnp.maximum(acc_ref[...] + b_ref[...], 0.0
                                 ).astype(o_ref.dtype)


def gcn_aggregate(a_hat_bf16, xw_bf16, b_f32, *, tm, tk, vmem_limit):
    n_pad = a_hat_bf16.shape[0]
    h_pad = xw_bf16.shape[1]
    grid = (n_pad // tm, n_pad // tk)
    return pl.pallas_call(
        gcn_agg_relu_kernel,
        out_shape=jax.ShapeDtypeStruct((n_pad, h_pad), jnp.bfloat16),
        grid_spec=pltpu.PrefetchScalarGridSpec(
            num_scalar_prefetch=0,
            grid=grid,
            in_specs=[
                pl.BlockSpec((tm, tk), lambda i, k: (i, k)),         # A stream
                pl.BlockSpec((n_pad, h_pad), lambda i, k: (0, 0)),   # XW resident
                pl.BlockSpec((1, h_pad), lambda i, k: (0, 0)),       # bias
            ],
            out_specs=pl.BlockSpec((tm, h_pad), lambda i, k: (i, 0)),
            scratch_shapes=[pltpu.VMEM((tm, h_pad), jnp.float32)],
        ),
        compiler_params=pltpu.CompilerParams(
            dimension_semantics=("parallel", "arbitrary"),
            vmem_limit_bytes=vmem_limit),
    )(a_hat_bf16, xw_bf16, b_f32)


# ----------------------------------------------------------------------------
# Kernel 3: fused layer-attention summarize + output linear
#   grid = (N/tm,): per-node-tile independent, 'parallel'
#   inputs : q [1,Hp] f32, W_out [Hp,Cp] bf16, b_out [1,Cp] f32, h_l [Np,Hp] bf16
#   outputs: out [Np,Cp] f32, alpha [Np,Lp] f32 (lane-dense, sliced outside)
# ----------------------------------------------------------------------------
def att_out_kernel(q_ref, w_ref, b_ref, *refs, num_layers, inv_temperature):
    h_refs = refs[:num_layers]
    o_ref = refs[num_layers]
    alpha_ref = refs[num_layers + 1]

    tm = o_ref.shape[0]
    l_pad = alpha_ref.shape[1]
    q = q_ref[...]                                                  # (1, Hp) f32

    lane = jax.lax.broadcasted_iota(jnp.int32, (tm, l_pad), 1)
    valid = lane < num_layers

    # Lane-dense (tm, Lp) logits slab: caps live vector state at one tile
    # regardless of n_layer; per-layer (tm,1) logit columns kept for the
    # weighted sum (exp recompute lands on the EUP slot, effectively free).
    slab = jnp.full((tm, l_pad), -1e30, jnp.float32)
    cols = []
    for l in range(num_layers):
        col = jnp.sum(h_refs[l][...].astype(jnp.float32) * q, axis=-1,
                      keepdims=True) * inv_temperature              # (tm, 1)
        cols.append(col)
        slab = jnp.where(lane == l, col, slab)

    m = jnp.max(slab, axis=-1, keepdims=True)                       # (tm, 1)
    e_slab = jnp.where(valid, jnp.exp(slab - m), 0.0)               # (tm, Lp)
    denom = jnp.sum(e_slab, axis=-1, keepdims=True)                 # (tm, 1)
    inv_denom = 1.0 / denom                                         # exact

    alpha_ref[...] = e_slab * inv_denom                             # lane-dense

    # Streaming weighted sum of layer outputs (f32 accumulation).
    h = jnp.zeros((tm, q.shape[1]), jnp.float32)
    for l in range(num_layers):
        h = h + jnp.exp(cols[l] - m) * h_refs[l][...].astype(jnp.float32)
    h = h * inv_denom

    o_ref[...] = (jnp.dot(h.astype(jnp.bfloat16), w_ref[...],
                          preferred_element_type=jnp.float32) + b_ref[...])


def att_summarize_and_out(hs, q, w_out_bf16, b_out, temperature, *,
                          tm, l_pad, vmem_limit):
    num_layers = len(hs)
    n_pad, h_pad = hs[0].shape
    c_pad = w_out_bf16.shape[1]
    kern = functools.partial(att_out_kernel, num_layers=num_layers,
                             inv_temperature=float(1.0 / temperature))
    h_specs = [pl.BlockSpec((tm, h_pad), lambda i: (i, 0))
               for _ in range(num_layers)]
    return pl.pallas_call(
        kern,
        out_shape=(jax.ShapeDtypeStruct((n_pad, c_pad), jnp.float32),
                   jax.ShapeDtypeStruct((n_pad, l_pad), jnp.float32)),
        grid_spec=pltpu.PrefetchScalarGridSpec(
            num_scalar_prefetch=0,
            grid=(n_pad // tm,),
            in_specs=[
                pl.BlockSpec((1, h_pad), lambda i: (0, 0)),      # q
                pl.BlockSpec((h_pad, c_pad), lambda i: (0, 0)),  # W_out
                pl.BlockSpec((1, c_pad), lambda i: (0, 0)),      # b_out
            ] + h_specs,
            out_specs=(pl.BlockSpec((tm, c_pad), lambda i: (i, 0)),
                       pl.BlockSpec((tm, l_pad), lambda i: (i, 0))),
        ),
        compiler_params=pltpu.CompilerParams(
            dimension_semantics=("parallel",),
            vmem_limit_bytes=vmem_limit),
    )(q, w_out_bf16, b_out, *hs)


# ----------------------------------------------------------------------------
# gcn normalization of the adjacency (sum duplicate edges, remaining self
# loops, symmetric norm) -- dense, plain JAX
# ----------------------------------------------------------------------------
def gcn_norm_adj(edge_index, num_nodes):
    src, dst = edge_index[0], edge_index[1]
    a = jnp.zeros((num_nodes, num_nodes), jnp.float32)
    a = a.at[dst, src].add(1.0)                 # message src -> dst; sum dups
    diag = jnp.diagonal(a)
    a = a + jnp.diag(jnp.where(diag > 0.0, 0.0, 1.0))   # add_remaining_self_loops
    deg = jnp.sum(a, axis=1)
    d_inv_sqrt = jnp.where(deg > 0.0, jax.lax.rsqrt(deg), 0.0)
    return a * d_inv_sqrt[:, None] * d_inv_sqrt[None, :]


# ----------------------------------------------------------------------------
# Full model forward
# ----------------------------------------------------------------------------
def att_gnn_forward(params, x, edge_index, temperature=1.0):
    n, f = x.shape
    n_layer = len(params["convs"])
    h_dim = params["convs"][0][0].shape[1]
    n_class = params["out_w"].shape[1]

    tm, tk, n_pad = _choose_tiles(n)
    f_pad = _round_up(f, 128)
    h_pad = _round_up(h_dim, 128)
    c_pad = _round_up(n_class, 128)
    l_pad = _round_up(n_layer, 128)
    vmem_limit = _vmem_limit_bytes()
    tm_rows = _row_tile(n_pad, 1024)        # XW + attention row tile

    a_hat = gcn_norm_adj(edge_index, n)
    a_hat = jnp.pad(a_hat, ((0, n_pad - n), (0, n_pad - n))).astype(jnp.bfloat16)

    h = jnp.pad(x.astype(jnp.float32),
                ((0, n_pad - n), (0, f_pad - f))).astype(jnp.bfloat16)

    hs = []
    for (w, b) in params["convs"]:
        in_dim, out_dim = w.shape
        in_pad = _round_up(in_dim, 128)
        w_p = jnp.pad(w, ((0, in_pad - in_dim),
                          (0, h_pad - out_dim))).astype(jnp.bfloat16)
        b_p = jnp.pad(b, ((0, 0), (0, h_pad - out_dim)))
        xw = xw_matmul(h, w_p, tm=tm_rows, vmem_limit=vmem_limit)   # bf16
        h = gcn_aggregate(a_hat, xw, b_p, tm=tm, tk=tk,
                          vmem_limit=vmem_limit)                    # bf16
        # TODO(synk): training-mode F.dropout (stochastic mask) omitted;
        #             inference-mode dropout is identity.
        hs.append(h)

    q_p = jnp.pad(params["att_q"], ((0, 0), (0, h_pad - h_dim)))
    w_out_p = jnp.pad(params["out_w"], ((0, h_pad - h_dim),
                                        (0, c_pad - n_class))).astype(jnp.bfloat16)
    b_out_p = jnp.pad(params["out_b"], ((0, 0), (0, c_pad - n_class)))

    out_p, alpha_p = att_summarize_and_out(hs, q_p, w_out_p, b_out_p,
                                           temperature, tm=tm_rows,
                                           l_pad=l_pad, vmem_limit=vmem_limit)
    return out_p[:n, :n_class], alpha_p[:n, :n_layer]


# ----------------------------------------------------------------------------
# Pure-JAX reference (for correctness check)
# ----------------------------------------------------------------------------
def reference_forward(params, x, edge_index, temperature=1.0):
    n = x.shape[0]
    a_hat = gcn_norm_adj(edge_index, n)
    hs = []
    h = x
    for (w, b) in params["convs"]:
        h = jnp.maximum(a_hat @ (h @ w) + b, 0.0)
        hs.append(h)
    hs = jnp.stack(hs, 0)                                  # (L, N, H)
    logits = jnp.einsum("lnh,h->nl", hs, params["att_q"][0]) / temperature
    alpha = jax.nn.softmax(logits, axis=-1)
    h_mix = jnp.einsum("nl,lnh->nh", alpha, hs)
    out = h_mix @ params["out_w"] + params["out_b"]
    return out, alpha


# ----------------------------------------------------------------------------
# Deterministic parameter init
# ----------------------------------------------------------------------------
def init_params(key, n_feat, n_hid, n_class, n_layer):
    def glorot(k, shape):
        fan_in, fan_out = shape
        lim = jnp.sqrt(6.0 / (fan_in + fan_out))
        return jax.random.uniform(k, shape, jnp.float32, -lim, lim)

    keys = jax.random.split(key, n_layer + 2)
    convs = []
    in_dim = n_feat
    for l in range(n_layer):
        w = glorot(keys[l], (in_dim, n_hid))
        b = jnp.zeros((1, n_hid), jnp.float32)
        convs.append((w, b))
        in_dim = n_hid
    att_q = glorot(keys[n_layer], (1, n_hid))
    out_w = glorot(keys[n_layer + 1], (n_hid, n_class))
    out_b = jnp.zeros((1, n_class), jnp.float32)
    return {"convs": convs, "att_q": att_q, "out_w": out_w, "out_b": out_b}


if __name__ == "__main__":
    # small config: n_feat=32, n_hid=32, n_class=4, n_layer=3, N=16 nodes
    N_NODES, N_FEAT, N_HID, N_CLASS, N_LAYER = 16, 32, 32, 4, 3
    N_EDGES = 40

    key = jax.random.PRNGKey(0)
    k_x, k_e, k_p = jax.random.split(key, 3)

    x = jax.random.normal(k_x, (N_NODES, N_FEAT), jnp.float32)
    src = jax.random.randint(k_e, (N_EDGES,), 0, N_NODES)
    dst = jax.random.randint(jax.random.fold_in(k_e, 1), (N_EDGES,), 0, N_NODES)
    # make the graph undirected (both directions present)
    edge_index = jnp.stack([jnp.concatenate([src, dst]),
                            jnp.concatenate([dst, src])], axis=0)

    params = init_params(k_p, N_FEAT, N_HID, N_CLASS, N_LAYER)

    out, alpha = att_gnn_forward(params, x, edge_index, temperature=1.0)
    jax.block_until_ready((out, alpha))

    assert out.shape == (N_NODES, N_CLASS)
    assert alpha.shape == (N_NODES, N_LAYER)
    assert bool(jnp.all(jnp.isfinite(out))) and bool(jnp.all(jnp.isfinite(alpha)))
    assert bool(jnp.max(jnp.abs(jnp.sum(alpha, axis=-1) - 1.0)) < 1e-2)

    # correctness vs pure-JAX f32 reference (loose tolerance: bf16 MXU operands
    # and bf16 layer-output storage)
    out_ref, alpha_ref = reference_forward(params, x, edge_index, 1.0)
    assert bool(jnp.allclose(out, out_ref, rtol=1e-1, atol=1e-1))
    assert bool(jnp.allclose(alpha, alpha_ref, rtol=1e-1, atol=5e-2))

    print("KERNEL_OK")
</pallas_src>

<mosaic_0001>
module attributes {stable_mosaic.version = 11 : i64} {
  func.func @xw_kernel(%arg0: i32, %arg1: memref<16x128xbf16, #tpu.memory_space<vmem>>, %arg2: memref<128x128xbf16, #tpu.memory_space<vmem>>, %arg3: memref<16x128xbf16, #tpu.memory_space<vmem>>) attributes {dimension_semantics = [#tpu.dimension_semantics<parallel>], iteration_bounds = array<i64: 1>, scalar_prefetch = 0 : i64, scratch_operands = 0 : i64, tpu.core_type = #tpu.core_type<tc>, window_params = [{transform_indices = @transform_0, window_bounds = array<i64: 16, 128>}, {pipeline_mode = #tpu.pipeline_mode<synchronous>, transform_indices = @transform_1, window_bounds = array<i64: 128, 128>}, {transform_indices = @transform_2, window_bounds = array<i64: 16, 128>}]} {
    %c0 = arith.constant 0 : index
    %c0_0 = arith.constant 0 : index
    %0 = vector.load %arg1[%c0, %c0_0] : memref<16x128xbf16, #tpu.memory_space<vmem>>, vector<16x128xbf16>
    %c0_1 = arith.constant 0 : index
    %c0_2 = arith.constant 0 : index
    %1 = vector.load %arg2[%c0_1, %c0_2] : memref<128x128xbf16, #tpu.memory_space<vmem>>, vector<128x128xbf16>
    %cst = arith.constant dense<0.000000e+00> : vector<16x128xf32>
    %2 = tpu.matmul %0, %1, %cst {dimension_numbers = #tpu.dot_dimension_numbers<[1], [0], [0], [1], [0, 0, 1, 1], [], []>} : vector<16x128xbf16>, vector<128x128xbf16>, vector<16x128xf32> -> vector<16x128xf32>
    %3 = arith.truncf %2 : vector<16x128xf32> to vector<16x128xbf16>
    %c0_3 = arith.constant 0 : index
    %c0_4 = arith.constant 0 : index
    %4 = vector.load %arg3[%c0_3, %c0_4] : memref<16x128xbf16, #tpu.memory_space<vmem>>, vector<16x128xbf16>
    tpu.vector_store %arg3[%c0_3, %c0_4], %3 {strides = array<i32>} : memref<16x128xbf16, #tpu.memory_space<vmem>>, vector<16x128xbf16>,
    return
  }
  func.func @transform_0(%arg0: i32) -> (i32, i32) {
    %c0_i32 = arith.constant 0 : i32
    %c0_i32_0 = arith.constant 0 : i32
    return %arg0, %c0_i32 : i32, i32
  }
  func.func @transform_1(%arg0: i32) -> (i32, i32) {
    %c0_i32 = arith.constant 0 : i32
    %c0_i32_0 = arith.constant 0 : i32
    %c0_i32_1 = arith.constant 0 : i32
    return %c0_i32, %c0_i32_0 : i32, i32
  }
  func.func @transform_2(%arg0: i32) -> (i32, i32) {
    %c0_i32 = arith.constant 0 : i32
    %c0_i32_0 = arith.constant 0 : i32
    return %arg0, %c0_i32 : i32, i32
  }
}

</mosaic_0001>

<bundles_post_ra>
// kernel: tpu_custom_call.1
= control target key start
LH: loop header
LB: loop body
LE: loop exit
PB: predicated region body
PF: predicated region fallthrough
CT: control target
= control target key end

     0   :  { %7 = vsyncpa [#allocation3], 0  ;;  %s325_s0 = inlined_call_operand.hbm [shape: bf16[16,128], index: 0, kind: input, shape index: {}]   ;;  %s326_s1 = inlined_call_operand.hbm [shape: bf16[128,128], index: 1, kind: input, shape index: {}]   ;;  %s327_s2 = inlined_call_operand.hbm [shape: bf16[16,128], index: 2, kind: output, shape index: {}]  }
   0x1   :  { %8 = vsyncpa [#allocation6], 0 }
   0x2   :  { %9 = vsyncpa [#allocation4], 0  ;;  %s14_s11 = sshll.u32 %s325_s0, 4  ;;  %s287_s12 = smov [#allocation2]   ;;  %s15_s11 = int_to_ptr.hbm [resolvable:$true] %s14_s11 }
   0x3   :  { %s16_s13 = sshll.u32 %s287_s12, 4  ;;  %s27_s16 = sshll.u32 %s326_s1, 4  ;;  %s17_s13 = int_to_ptr.vmem [resolvable:$true] %s16_s13  ;;  %s28_s16 = int_to_ptr.hbm [resolvable:$true] %s27_s16 }
   0x4   :  { %s288_s17 = smov 64   ;;  %s289_s18 = smov 4  }
   0x5   :  { %22 = dma.hbm_to_vmem [thread:$0]  %s15_s11, 128, %s17_s13, [#allocation3], %s288_s17, %s288_s17, %s289_s18  }
   0x6   :  { %s290_s19 = smov [#allocation5]  }
   0x7   :  { %s29_s20 = sshll.u32 %s290_s19, 4  ;;  %s30_s20 = int_to_ptr.vmem [resolvable:$true] %s29_s20 }
   0x8   :  { %35 = dma.hbm_to_vmem [thread:$0]  %s28_s16, 1024, %s30_s20, [#allocation6], %s288_s17, %s288_s17, %s289_s18  }
   0x9   :  { %281 = dma.done.wait [#allocation3], 128  }
   0xa   :  { %282 = vsyncadd [#allocation3], 4294967168 }
   0xb   :  { %283 = dma.done.wait [#allocation6], 1024  }
   0xc   :  { %284 = vsyncadd [#allocation6], 4294966272  ;;  %v198_v0 = vld [vmem:[#allocation5 + $0x38] sm:$0xff]  ;;  %v197_v1 = vld [vmem:[#allocation5 + $0x30] sm:$0xff]  ;;  %s291_s0 = smov [#allocation7]   ;;  %s140_s23 = sshll.u32 %s327_s2, 4  ;;  %s141_s23 = int_to_ptr.hbm [resolvable:$true] %s140_s23 }
   0xd   :  { %116 = vmatpush.bf16.msra.mxu0 %v198_v0  ;;  %v196_v2 = vld [vmem:[#allocation5 + $0x28] sm:$0xff]  ;;  %v195_v3 = vld [vmem:[#allocation5 + $0x20] sm:$0xff]  ;;  %v194_v4 = vld [vmem:[#allocation5 + $0x18] sm:$0xff]  ;;  %s138_s1 = sshll.u32 %s291_s0, 4  ;;  %s139_s1 = int_to_ptr.vmem [resolvable:$true] %s138_s1 }
   0xe   :  { %v193_v5 = vld [vmem:[#allocation5 + $0x10] sm:$0xff]  ;;  %v192_v6 = vld [vmem:[#allocation5 + $0x8] sm:$0xff]  ;;  %v191_v7 = vld [vmem:[#allocation5] sm:$0xff] }
   0xf   :  { %v190_v8 = vld [vmem:[#allocation2] sm:$0xff] }
  0x11   :  { %117 = vmatpush.bf16.msra.mxu0 %v197_v1 }
  0x15   :  { %118 = vmatpush.bf16.msra.mxu0 %v196_v2 }
  0x19   :  { %119 = vmatpush.bf16.msra.mxu0 %v195_v3 }
  0x1d   :  { %120 = vmatpush.bf16.msra.mxu0 %v194_v4 }
  0x21   :  { %121 = vmatpush.bf16.msra.mxu0 %v193_v5 }
  0x25   :  { %122 = vmatpush.bf16.msra.mxu0 %v192_v6 }
  0x29   :  { %123 = vmatpush.bf16.msra.mxu0 %v191_v7 }
  0x2c   :  { %124 = vmatmul.bf16.vlgmr.msra.gmra.mxu0 %v190_v8 }
  0xa9   :  { %v125_v9 = vpop.f32.mrf.mxu0 }
  0xb1   :  { %v127_v10 = vpop.f32.mrf.mxu0 }
  0xb2   :  { %v202_v11 = vpack.c.bf16 %v127_v10, %v125_v9 }
  0xb4   :  { %203 = vst [vmem:[#allocation7] sm:$0xff] %v202_v11  }
  0xb5   :  { %146 = dma.vmem_to_hbm [thread:$0]  %s139_s1, 128, %s141_s23, [#allocation4], %s288_s17, %s288_s17, %s289_s18  }
  0xb6   :  { %285 = dma.done.wait [#allocation4], 128  }
  0xb7   :  { %286 = vsyncadd [#allocation4], 4294967168 }
  0xb8   :  { %151 = vsyncpa [#allocation3], 1 }
  0xb9   :  { %152 = vsyncpa [#allocation6], 1 }
  0xba   :  { %153 = vsyncpa [#allocation4], 1 }

</bundles_post_ra>
